<compile_context>
chip_gen: v5e
topology: v5e:2x2
jax: 0.10.0
libtpu: 0.0.40
codegen_flags: <defaults>
</compile_context>

<pallas_src>
import math

import jax
import jax.numpy as jnp
from jax.experimental import pallas as pl
from jax.experimental.pallas import tpu as pltpu

_LANES = 128


def _round_up(x, m):
    return ((x + m - 1) // m) * m


def _bfn_cts_flow_kernel(alpha_ref, std_ref, data_ref, noise_ref, mean_ref):
    # alpha_ref/std_ref: (samples_tile, 1, 1) f32, precomputed in the wrapper
    # (no per-step exp/sqrt/broadcast re-materialization in the inner loop).
    x = data_ref[...].astype(jnp.float32)
    n = noise_ref[...].astype(jnp.float32)
    mean_ref[...] = (alpha_ref[...] * x + std_ref[...] * n).astype(mean_ref.dtype)


def cts_bayesian_flow_forward(data, t, noise=None, *, min_variance=1e-6,
                              seed=0, target_block_bytes=2 << 20):
    """Pallas implementation of CtsBayesianFlow.forward (used by BFN.forward).

    Args:
      data:  (B, C, H, W) array (f32 or bf16), NCHW (any trailing dims work).
      t:     per-sample time; (B, 1, 1, 1) or data-shaped (constant per sample,
             as produced by BFN.sample_t).  Spatially varying t is not supported.
      noise: optional standard-normal array of data.shape.  If None, Gaussian
             noise is drawn in the wrapper directly in the blocked layout.
    Returns:
      (mean, None) with mean shaped like data (precision slot kept for API
      parity with the PyTorch module).
    """
    orig_shape = data.shape
    B = orig_shape[0]
    D = 1
    for s in orig_shape[1:]:
        D *= s

    itemsize = jnp.dtype(data.dtype).itemsize
    sublane_mult = max(8, 32 // itemsize)        # 8 for f32, 16 for bf16

    # BFN.sample_t broadcasts a single scalar t over each sample -> collapse.
    t_b = jnp.reshape(t, (B, -1))[:, 0].astype(jnp.float32)

    # Hoisted per-sample flow parameters: one tiny (B,)-sized XLA op.
    log_min_variance = jnp.float32(math.log(min_variance))
    post_var = jnp.exp(t_b * log_min_variance)   # min_variance ** t
    alpha_t = 1.0 - post_var
    std = jnp.sqrt(alpha_t * post_var)
    alpha3 = alpha_t.reshape(B, 1, 1)
    std3 = std.reshape(B, 1, 1)

    # Lane/sublane-dense per-sample layout with *minimal* padding.
    d_pad = _round_up(D, _LANES * sublane_mult)
    rows = d_pad // _LANES

    def to_blocks(x):
        x2 = jnp.reshape(x, (B, D))
        if d_pad != D:
            x2 = jnp.pad(x2, ((0, 0), (0, d_pad - D)))
        return jnp.reshape(x2, (B, rows, _LANES))

    data3 = to_blocks(data)
    if noise is None:
        # Draw the noise directly in the blocked layout (no extra pad pass).
        # TODO(synk): on real TPU hardware an in-kernel pltpu.prng_seed +
        # pltpu.stateful_normal path cuts HBM traffic from 12 to 8 B/elem for
        # this mem-bound kernel, but those primitives have no interpret/CPU
        # lowering, so the portable wrapper-side draw is used here.
        noise3 = jax.random.normal(jax.random.PRNGKey(seed),
                                   (B, rows, _LANES), dtype=data.dtype)
    else:
        noise3 = to_blocks(noise)

    # Block sizing: ~target_block_bytes per tiled ref per grid step.
    per_sample_bytes = rows * _LANES * itemsize
    if per_sample_bytes >= target_block_bytes:
        samples_tile = 1
        target_rows = max(sublane_mult, target_block_bytes // (_LANES * itemsize))
        rows_tile = min(rows, (target_rows // sublane_mult) * sublane_mult)
    else:
        rows_tile = rows
        samples_tile = max(1, min(B, target_block_bytes // per_sample_bytes))
        # Keep >= 2 parallel grid steps when the batch allows, so both of
        # v7x's TensorCores get work (no-op on single-TC v5e/v6e).
        if samples_tile >= B and B > 1:
            samples_tile = -(-B // 2)

    grid = (pl.cdiv(B, samples_tile), pl.cdiv(rows, rows_tile))

    scalar_spec = pl.BlockSpec((samples_tile, 1, 1), lambda i, j: (i, 0, 0))
    tile_spec = pl.BlockSpec((samples_tile, rows_tile, _LANES),
                             lambda i, j: (i, j, 0))

    compiler_params = pltpu.CompilerParams(
        dimension_semantics=("parallel", "parallel"),
        # 3 tiled refs x 2 buffers x ~2 MiB ~= 12 MiB: well under the scoped
        # VMEM budget on v5e/v6e and within v7x's smaller 64 MiB physical VMEM.
        vmem_limit_bytes=32 * 1024 * 1024,
    )

    mean3 = pl.pallas_call(
        _bfn_cts_flow_kernel,
        out_shape=jax.ShapeDtypeStruct((B, rows, _LANES), data.dtype),
        grid=grid,
        in_specs=[scalar_spec, scalar_spec, tile_spec, tile_spec],
        out_specs=tile_spec,
        compiler_params=compiler_params,
    )(alpha3, std3, data3, noise3)

    mean = jnp.reshape(mean3, (B, d_pad))
    if d_pad != D:
        mean = mean[:, :D]
    mean = mean.reshape(orig_shape)
    return (mean, None)


def cts_bayesian_flow_reference(data, t, noise, *, min_variance=1e-6):
    """Pure-JAX reference mirroring the PyTorch forward (noise passed in)."""
    post_var = jnp.power(min_variance, t)
    alpha_t = 1.0 - post_var
    mean_mean = alpha_t * data
    mean_std = jnp.sqrt(alpha_t * post_var)
    return mean_mean + mean_std * noise


if __name__ == "__main__":
    key = jax.random.PRNGKey(0)
    k_data, k_t, k_noise, k_data2, k_t2, k_noise2 = jax.random.split(key, 6)

    # Small image-like shape implied by BFN.forward.
    B, C, H, W = 2, 4, 16, 16
    data = jax.random.normal(k_data, (B, C, H, W), dtype=jnp.float32)
    t_per_sample = jax.random.uniform(k_t, (B, 1, 1, 1), dtype=jnp.float32)
    # BFN.forward expects t.shape == data.shape (constant per sample).
    t = jnp.broadcast_to(t_per_sample, data.shape)
    noise = jax.random.normal(k_noise, (B, C, H, W), dtype=jnp.float32)

    # Path 1: externally supplied noise -> exactly checkable against reference.
    mean, precision = cts_bayesian_flow_forward(data, t, noise=noise)
    mean = jax.block_until_ready(mean)
    assert precision is None
    ref = cts_bayesian_flow_reference(data, t, noise)
    assert mean.shape == (B, C, H, W)
    assert jnp.allclose(mean, ref, atol=1e-5, rtol=1e-5)

    # Path 2: non-128-aligned feature count exercises the minimal-padding tail.
    data2 = jax.random.normal(k_data2, (2, 3, 7, 5), dtype=jnp.float32)
    t2 = jnp.broadcast_to(
        jax.random.uniform(k_t2, (2, 1, 1, 1), dtype=jnp.float32), data2.shape)
    noise2 = jax.random.normal(k_noise2, data2.shape, dtype=jnp.float32)
    mean2, _ = cts_bayesian_flow_forward(data2, t2, noise=noise2)
    mean2 = jax.block_until_ready(mean2)
    ref2 = cts_bayesian_flow_reference(data2, t2, noise2)
    assert mean2.shape == data2.shape
    assert jnp.allclose(mean2, ref2, atol=1e-5, rtol=1e-5)

    # Path 3: noise=None (wrapper-drawn Gaussian, different realization but the
    # same distribution) -- sanity-check shape and finiteness.
    mean_rng, precision_rng = cts_bayesian_flow_forward(data, t, noise=None,
                                                        seed=1234)
    mean_rng = jax.block_until_ready(mean_rng)
    assert precision_rng is None
    assert mean_rng.shape == (B, C, H, W)
    assert bool(jnp.all(jnp.isfinite(mean_rng)))

    print("KERNEL_OK")
</pallas_src>

<mosaic_0001>
module attributes {stable_mosaic.version = 11 : i64} {
  func.func @_bfn_cts_flow_kernel(%arg0: i32, %arg1: i32, %arg2: memref<1x1x1xf32, #tpu.memory_space<vmem>>, %arg3: memref<1x1x1xf32, #tpu.memory_space<vmem>>, %arg4: memref<1x8x128xf32, #tpu.memory_space<vmem>>, %arg5: memref<1x8x128xf32, #tpu.memory_space<vmem>>, %arg6: memref<1x8x128xf32, #tpu.memory_space<vmem>>) attributes {dimension_semantics = [#tpu.dimension_semantics<parallel>, #tpu.dimension_semantics<parallel>], iteration_bounds = array<i64: 2, 1>, scalar_prefetch = 0 : i64, scratch_operands = 0 : i64, tpu.core_type = #tpu.core_type<tc>, window_params = [{transform_indices = @transform_0, window_bounds = array<i64: 1, 1, 1>}, {transform_indices = @transform_1, window_bounds = array<i64: 1, 1, 1>}, {transform_indices = @transform_2, window_bounds = array<i64: 1, 8, 128>}, {transform_indices = @transform_3, window_bounds = array<i64: 1, 8, 128>}, {transform_indices = @transform_4, window_bounds = array<i64: 1, 8, 128>}]} {
    %c0 = arith.constant 0 : index
    %c0_0 = arith.constant 0 : index
    %c0_1 = arith.constant 0 : index
    %0 = vector.load %arg4[%c0, %c0_0, %c0_1] : memref<1x8x128xf32, #tpu.memory_space<vmem>>, vector<1x8x128xf32>
    %c0_2 = arith.constant 0 : index
    %c0_3 = arith.constant 0 : index
    %c0_4 = arith.constant 0 : index
    %1 = vector.load %arg5[%c0_2, %c0_3, %c0_4] : memref<1x8x128xf32, #tpu.memory_space<vmem>>, vector<1x8x128xf32>
    %c0_5 = arith.constant 0 : index
    %c0_6 = arith.constant 0 : index
    %c0_7 = arith.constant 0 : index
    %2 = vector.load %arg2[%c0_5, %c0_6, %c0_7] : memref<1x1x1xf32, #tpu.memory_space<vmem>>, vector<1x1x1xf32>
    %3 = vector.broadcast %2 : vector<1x1x1xf32> to vector<1x8x128xf32>
    %4 = arith.mulf %3, %0 : vector<1x8x128xf32>
    %c0_8 = arith.constant 0 : index
    %c0_9 = arith.constant 0 : index
    %c0_10 = arith.constant 0 : index
    %5 = vector.load %arg3[%c0_8, %c0_9, %c0_10] : memref<1x1x1xf32, #tpu.memory_space<vmem>>, vector<1x1x1xf32>
    %6 = vector.broadcast %5 : vector<1x1x1xf32> to vector<1x8x128xf32>
    %7 = arith.mulf %6, %1 : vector<1x8x128xf32>
    %8 = arith.addf %4, %7 : vector<1x8x128xf32>
    %c0_11 = arith.constant 0 : index
    %c0_12 = arith.constant 0 : index
    %c0_13 = arith.constant 0 : index
    %9 = vector.load %arg6[%c0_11, %c0_12, %c0_13] : memref<1x8x128xf32, #tpu.memory_space<vmem>>, vector<1x8x128xf32>
    tpu.vector_store %arg6[%c0_11, %c0_12, %c0_13], %8 {strides = array<i32>} : memref<1x8x128xf32, #tpu.memory_space<vmem>>, vector<1x8x128xf32>,
    return
  }
  func.func @transform_0(%arg0: i32, %arg1: i32) -> (i32, i32, i32) {
    %c0_i32 = arith.constant 0 : i32
    %c0_i32_0 = arith.constant 0 : i32
    %c0_i32_1 = arith.constant 0 : i32
    return %arg0, %c0_i32, %c0_i32_0 : i32, i32, i32
  }
  func.func @transform_1(%arg0: i32, %arg1: i32) -> (i32, i32, i32) {
    %c0_i32 = arith.constant 0 : i32
    %c0_i32_0 = arith.constant 0 : i32
    %c0_i32_1 = arith.constant 0 : i32
    return %arg0, %c0_i32, %c0_i32_0 : i32, i32, i32
  }
  func.func @transform_2(%arg0: i32, %arg1: i32) -> (i32, i32, i32) {
    %c0_i32 = arith.constant 0 : i32
    %c0_i32_0 = arith.constant 0 : i32
    return %arg0, %arg1, %c0_i32 : i32, i32, i32
  }
  func.func @transform_3(%arg0: i32, %arg1: i32) -> (i32, i32, i32) {
    %c0_i32 = arith.constant 0 : i32
    %c0_i32_0 = arith.constant 0 : i32
    return %arg0, %arg1, %c0_i32 : i32, i32, i32
  }
  func.func @transform_4(%arg0: i32, %arg1: i32) -> (i32, i32, i32) {
    %c0_i32 = arith.constant 0 : i32
    %c0_i32_0 = arith.constant 0 : i32
    return %arg0, %arg1, %c0_i32 : i32, i32, i32
  }
}

</mosaic_0001>

<bundles_post_ra>
// kernel: tpu_custom_call.1
= control target key start
LH: loop header
LB: loop body
LE: loop exit
PB: predicated region body
PF: predicated region fallthrough
CT: control target
= control target key end

     0   :  { %9 = vsyncpa [#allocation3], 0  ;;  %s863_s0 = inlined_call_operand.vmem [shape: f32[2,1,1], index: 0, kind: input, shape index: {}]   ;;  %s864_s1 = inlined_call_operand.vmem [shape: f32[2,1,1], index: 1, kind: input, shape index: {}]   ;;  %s865_s2 = inlined_call_operand.hbm [shape: f32[2,8,128], index: 2, kind: input, shape index: {}]   ;;  %s866_s3 = inlined_call_operand.hbm [shape: f32[2,8,128], index: 3, kind: input, shape index: {}]   ;;  %s867_s4 = inlined_call_operand.hbm [shape: f32[2,8,128], index: 4, kind: output, shape index: {}]  }
   0x1   :  { %11 = vsyncpa [#allocation3 + $0x1], 0 }
   0x2   :  { %12 = vsyncpa [#allocation6], 0 }
   0x3   :  { %14 = vsyncpa [#allocation6 + $0x1], 0 }
   0x4   :  { %15 = vsyncpa [#allocation4], 0 }
   0x5   :  { %17 = vsyncpa [#allocation4 + $0x1], 0  ;;  %s722_s15 = smov 0   ;;  %s724_s16 = smov 0  }
   0x6   :  { %s726_s17 = smov 0   ;;  %s728_s18 = smov 0  }
   0x7   :  { %s730_s19 = smov 0   ;;  %s732_s20 = smov 0  }
   0x8 LB: > { %s461_s21 = sadd.s32 4294967295, %s694_s20   ;;  %s462_s22 = sadd.s32 4294967294, %s694_s20   ;;  %s694_s20 = sphi %s732_s20, %s23_s20   ;;  %s690_s19 = sphi %s730_s19, %s879_s19   ;;  %s686_s18 = sphi %s728_s18, %s878_s18   ;;  %s682_s17 = sphi %s726_s17, %s877_s17   ;;  %s678_s16 = sphi %s724_s16, %s876_s16   ;;  %s674_s15 = sphi %s722_s15, %s875_s15  }
   0x9   : > { %s35_s23 = sadd.s32 1, %s690_s19  ;;  %s96_s24 = sadd.s32 1, %s682_s17 }
   0xa   : > { %p37_p0 = scmp.ge.s32.totalorder %s35_s23, 2  ;;  %p103_p1 = scmp.ne.s32.totalorder %s682_s17, %s678_s16 }
   0xb   : > { %p104_p2 = scmp.eq.s32.totalorder %s694_s20, 0  ;;  %p109_p3 = scmp.ne.s32.totalorder %s678_s16, %s674_s15 }
   0xc   : > { %s881_s23 = smov (%p37_p0, %s35_s23), 0  ;;  %p110_p5 = scmp.eq.s32.totalorder %s461_s21, 0 }
   0xd   : > { %869 = sst [smem:[#allocation11_spill]] %s881_s23  ;;  %p763_p4 = por %p104_p2, %p103_p1 }
   0xe   : > { %s91_s26 = ssub.s32 %s690_s19, %s881_s23  ;;  %p163_p6 = scmp.eq.s32.totalorder %s461_s21, 1 }
   0xf   : > { %p94_p7 = scmp.eq.s32.totalorder %s91_s26, 0  ;;  %p769_p8 = por %p110_p5, %p109_p3 }
  0x10   : > { %p773_p9 = por %p163_p6, %p103_p1  ;;  %p169_p10 = scmp.eq.s32.totalorder %s462_s22, 1 }
  0x11   : > { %s778_s29 = scalar_select %p94_p7, %s682_s17, %s96_s24  }
  0x12   : > { %p780_p11 = por %p169_p10, %p109_p3  ;;  %p464_p12 = scmp.ge.s32.totalorder %s694_s20, 2 }
  0x13   : > { %p494_p13 = scmp.lt.s32.totalorder %s694_s20, 2  ;;  %s201_s5 = sand.u32 1, %s682_s17  }
  0x14   : > { %s465_s6 = sshll.u32 %s201_s5, 3  ;;  %s466_s7 = sshll.u32 %s690_s19, 3 }
  0x15   : > { %s210_s10 = scalar_lea.hbm %s865_s2, %s466_s7  ;;  %s205_s11 = scalar_lea.vmem [#allocation2], %s465_s6 }
  0x16   : > { %s214_s12 = sshll.u32 %s205_s11, 4  ;;  %s212_s13 = sshll.u32 %s210_s10, 4  ;;  %s215_s12 = int_to_ptr.vmem [resolvable:$true] %s214_s12  ;;  %s213_s13 = int_to_ptr.hbm [resolvable:$true] %s212_s13 }
  0x17   : > { %p484_p0 = pnand %p494_p13, %p763_p4  ;;  %p469_p1 = scmp.ge.s32.totalorder %s694_s20, 1 }
  0x18   : > { %p239_p2 = scmp.lt.s32.totalorder %s694_s20, 3  ;;  %s202_s14 = scalar_lea.sflag [#allocation3], %s201_s5 }
  0x19   : > { %486 = dma.hbm_to_vmem [thread:$0]  (!%p484_p0), %s213_s13, 128, %s215_s12, %s202_s14  }
  0x1a   : > { %p240_p3 = pnand %p469_p1, %p239_p2  ;;  %s230_s24 = scalar_lea.hbm %s866_s3, %s466_s7 }
  0x1b   : > { %s225_s26 = scalar_lea.vmem [#allocation5], %s465_s6  ;;  %s232_s8 = sshll.u32 %s230_s24, 4  ;;  %s233_s8 = int_to_ptr.hbm [resolvable:$true] %s232_s8 }
  0x1c   : > { %s234_s23 = sshll.u32 %s225_s26, 4  ;;  %s222_s9 = scalar_lea.sflag [#allocation6], %s201_s5  ;;  %s235_s23 = int_to_ptr.vmem [resolvable:$true] %s234_s23 }
  0x1d   : > { %489 = dma.hbm_to_vmem [thread:$0]  (!%p484_p0), %s233_s8, 128, %s235_s23, %s222_s9  }
  0x1e   : > { %243 = sbr.rel (%p240_p3) target bundleno = 174 (0xae), region = 36  ;;  %s799_s25 = sand.u32 (!%p240_p3), 1, %s678_s16  }
  0x1f   : > { %s802_s10 = sshll.u32 (!%p240_p3), %s799_s25, 3  ;;  %s246_s11 = scalar_lea.sflag (!%p240_p3), [#allocation3], %s799_s25 }
  0x20   : > { %s249_s12 = scalar_lea.vmem (!%p240_p3), [#allocation2], %s802_s10 }
  0x23   : > { %661 = dma.done.wait (%p769_p8), %s246_s11, 128  }
  0x24   : > { %663 = vsyncadd (%p769_p8), %s246_s11, 4294967168  ;;  %s256_s23 = scalar_lea.sflag [#allocation6], %s799_s25  ;;  %s259_s5 = scalar_lea.vmem [#allocation5], %s802_s10 }
  0x25   : > { %665 = dma.done.wait (%p769_p8), %s256_s23, 128  }
  0x26   : > { %667 = vsyncadd (%p769_p8), %s256_s23, 4294967168  ;;  %p296_p4 = scmp.lt.s32.totalorder %s686_s18, 1  ;;  %v696_v0 = vmov 0   ;;  %s474_s27 = sshll.u32 %s686_s18, 3  ;;  %v302_v4 = vld [vmem:[%s249_s12] sm:$0xff]  ;;  %v303_v5 = vld [vmem:[%s259_s5] sm:$0xff] }
  0x27   : > { %545 = vset.pattern.permute.xlu0 %v696_v0  ;;  %s334_s9 = scalar_lea.hbm %s867_s4, %s474_s27  ;;  %s295_s11 = scalar_lea.vmem [#allocation7], %s802_s10 }
  0x28   : > { %s297_s6 = scalar_select %p296_p4, %s686_s18, 1 }
  0x29   : > { %s336_s23 = sshll.u32 %s295_s11, 4  ;;  %s338_s7 = sshll.u32 %s334_s9, 4  ;;  %s337_s23 = int_to_ptr.vmem [resolvable:$true] %s336_s23  ;;  %s339_s7 = int_to_ptr.hbm [resolvable:$true] %s338_s7 }
  0x2a   : > { %s298_s14 = scalar_lea.vmem %s863_s0, %s297_s6  ;;  %s301_s24 = scalar_lea.vmem %s864_s1, %s297_s6 }
  0x2b   : > { %v546_v1 = vld [vmem:[%s298_s14] ss:$0 sm:$0xff]  ;;  %s323_s6 = scalar_lea.sflag [#allocation4], %s799_s25  ;;  %s622_s13 = sshra.s32 %s339_s7, 4  ;;  %s623_s13 = int_to_ptr.hbm [resolvable:$true] %s622_s13 }
  0x2c   : > { %308 = vperm.xlu0 %545, %v546_v1   ;;  %v547_v2 = vld [vmem:[%s301_s24] ss:$0 sm:$0xff]  ;;  %s624_s18 = scalar_lea.hbm %s623_s13, 8  ;;  %s628_s10 = scalar_lea.hbm %s867_s4, 16 }
  0x2d   : > { %p625_p5 = scmp.ne.s32.totalorder %s623_s13, %s624_s18  ;;  %p629_p8 = scmp.lt.s32.totalorder %s623_s13, %s867_s4 }
  0x2e   : > { %p630_p10 = scmp.lt.s32.totalorder %s628_s10, %s624_s18 }
  0x2f   : > { %p626_p6 = pnand %p625_p5, %p773_p9 }
  0x30   : > { %p631_p13 = por %p630_p10, %p629_p8 }
  0x31   : > { %p627_p7 = pneg %p626_p6 }
  0x33   : > { %p632_p0 = pnand %p631_p13, %p627_p7 }
  0x34   : > { %316 = vperm.xlu0 %545, %v547_v2  }
  0x9e   : > { %v309_v3 = vpop.permute.xlu0 %308 }
  0x9f   : > { %v311_v7 = vmul.f32 %v309_v3, %v302_v4 }
  0xa6   : > { %v317_v6 = vpop.permute.xlu0 %316 }
  0xa7   : > { %v319_v8 = vmul.f32 %v317_v6, %v303_v5 }
  0xa9   : > { %v320_v9 = vadd.f32 %v319_v8, %v311_v7 }
  0xab   : > { %321 = vst [vmem:[%s295_s11] sm:$0xff] %v320_v9 }
  0xac   : > { %635 = shalt.err (!%p632_p0)
}
  0xad   : > { %481 = dma.vmem_to_hbm [thread:$0]  (%p773_p9), %s337_s23, 128, %s339_s7, %s323_s6  }
  0xae PF: > { %s350_s25 = sand.u32 1, %s674_s15   ;;  %p491_p1 = pnand %p464_p12, %p780_p11 }
  0xaf   : > { %s351_s22 = scalar_lea.sflag [#allocation4], %s350_s25 }
  0xb0   : > { %p492_p2 = pneg %p491_p1 }
  0xb2   : > { %669 = dma.done.wait (%p492_p2), %s351_s22, 128  }
  0xb3   : > { %671 = vsyncadd (%p492_p2), %s351_s22, 4294967168  ;;  %s23_s20 = sadd.s32 1, %s694_s20   ;;  %s874_s28 = sld [smem:[#allocation11_spill]] }
  0xb4   : > { %p20_p3 = scmp.ge.s32.totalorder %s23_s20, 4   ;;  %s875_s15 = smov %s678_s16 }
  0xb5   : > { %s876_s16 = smov %s682_s17  ;;  %s877_s17 = smov %s778_s29 }
  0xb6   : > { %s878_s18 = smov %s690_s19  ;;  %22 = sbr.rel (!%p20_p3) target bundleno = 8 (0x8), region = 100 }
  0xb9   : > { %s879_s19 = smov %s874_s28 }
  0xbb   :  { %357 = vsyncpa [#allocation3], 1 }
  0xbc   :  { %359 = vsyncpa [#allocation3 + $0x1], 1 }
  0xbd   :  { %360 = vsyncpa [#allocation6], 1 }
  0xbe   :  { %362 = vsyncpa [#allocation6 + $0x1], 1 }
  0xbf   :  { %363 = vsyncpa [#allocation4], 1 }
  0xc0   :  { %365 = vsyncpa [#allocation4 + $0x1], 1 }

</bundles_post_ra>
